<compile_context>
chip_gen: v5e
topology: v5e:2x2
jax: 0.10.0
libtpu: 0.0.40
codegen_flags: <defaults>
</compile_context>

<pallas_src>
import jax
import jax.numpy as jnp
from jax.experimental import pallas as pl
from jax.experimental.pallas import tpu as pltpu


def _round_up(a, m):
    return ((a + m - 1) // m) * m


# ---------------------------------------------------------------------------
# Fast path: Linear(1, 1)  ->  elementwise y = x * w + b on the VPU.
# ---------------------------------------------------------------------------
_LANES = 512       # slab width: multiple of 128 -> unmasked, lane-dense stores
_SUBLANES = 8
_TM_MAX = 2048     # (2048, 512) f32 block = 4 MiB per buffer (~HBM roofline)


def _fma_kernel(w_ref, b_ref, x_ref, o_ref):
    w = w_ref[0]  # scalar weight from SMEM
    b = b_ref[0]  # scalar bias from SMEM
    o_ref[...] = (x_ref[...] * w + b).astype(o_ref.dtype)


def _linear_1x1(x, weight, bias):
    B = x.shape[0]
    Out = weight.shape[0]

    flat = x.reshape(-1)
    n = flat.shape[0]
    padded = _round_up(n, _SUBLANES * _LANES)
    rows = padded // _LANES

    tm = min(rows, _TM_MAX)
    if rows <= _TM_MAX and rows >= 1024:
        # v7x megacore: >=2 parallel tiles while each half stays >=1 MiB.
        tm = _round_up((rows + 1) // 2, _SUBLANES)
    rows = _round_up(rows, tm)
    padded = rows * _LANES

    # Skip the wrapper-side pad (an extra HBM pass) when already aligned.
    if padded == n:
        slab = flat.reshape(rows, _LANES)
    else:
        slab = jnp.pad(flat, (0, padded - n)).reshape(rows, _LANES)

    w_s = weight.reshape(-1).astype(x.dtype)  # (1,)
    b_s = bias.reshape(-1).astype(x.dtype)    # (1,)

    itemsize = jnp.dtype(x.dtype).itemsize
    out = pl.pallas_call(
        _fma_kernel,
        out_shape=jax.ShapeDtypeStruct((rows, _LANES), x.dtype),
        grid_spec=pltpu.PrefetchScalarGridSpec(
            num_scalar_prefetch=0,
            grid=(rows // tm,),
            in_specs=[
                pl.BlockSpec(memory_space=pltpu.MemorySpace.SMEM),  # weight
                pl.BlockSpec(memory_space=pltpu.MemorySpace.SMEM),  # bias
                pl.BlockSpec((tm, _LANES), lambda i: (i, 0)),
            ],
            out_specs=pl.BlockSpec((tm, _LANES), lambda i: (i, 0)),
        ),
        compiler_params=pltpu.CompilerParams(
            dimension_semantics=("parallel",),
        ),
        cost_estimate=pl.CostEstimate(
            flops=2 * padded,
            transcendentals=0,
            bytes_accessed=2 * itemsize * padded + 2 * itemsize,
        ),
    )(w_s, b_s, slab)

    if padded == n:
        return out.reshape(B, Out)
    return out.reshape(-1)[:n].reshape(B, Out)


# ---------------------------------------------------------------------------
# General path: tiled matmul, bias folded into the accumulator init.
# ---------------------------------------------------------------------------
def _matmul_bias_kernel(x_ref, wt_ref, b_ref, o_ref, acc_ref):
    k = pl.program_id(2)

    @pl.when(k == 0)
    def _():
        # Fold the bias into the accumulator init: saves an epilogue vld+add.
        acc_ref[...] = jnp.broadcast_to(
            b_ref[...].astype(jnp.float32), acc_ref.shape
        )

    acc_ref[...] += jnp.dot(
        x_ref[...], wt_ref[...], preferred_element_type=jnp.float32
    )

    @pl.when(k == pl.num_programs(2) - 1)
    def _():
        o_ref[...] = acc_ref[...].astype(o_ref.dtype)


def prepare_linear_params(weight, bias, *, use_bf16=False):
    """One-time prep (hoisted out of the per-call path): W^T, pad, cast."""
    Out, In = weight.shape
    # Tiles: multiples of 256/128 for the 256x256 (v6e/v7x) / 4x128^2 (v5e)
    # MXU.  tm=tn=512, tk=1024 f32 => ~16 MiB double-buffered, safe under the
    # v7x 64 MiB VMEM budget and far larger on v5e/v6e's 128 MiB.
    tn = min(512, _round_up(Out, 128))
    tk = min(1024, _round_up(In, 128))
    Inp, Outp = _round_up(In, tk), _round_up(Out, tn)
    in_dtype = jnp.bfloat16 if use_bf16 else weight.dtype
    wt_p = jnp.pad(weight.T, ((0, Inp - In), (0, Outp - Out))).astype(in_dtype)
    b_p = jnp.pad(bias, (0, Outp - Out)).reshape(1, Outp).astype(jnp.float32)
    return dict(wt=wt_p, b=b_p, In=In, Out=Out, Inp=Inp, Outp=Outp,
                tn=tn, tk=tk, use_bf16=use_bf16)


def _linear_tiled(x, params):
    B, In = x.shape
    assert In == params["In"]
    Out, Inp, Outp = params["Out"], params["Inp"], params["Outp"]
    tn, tk = params["tn"], params["tk"]
    in_dtype = jnp.bfloat16 if params["use_bf16"] else x.dtype

    tm = min(512, _round_up(B, 8))
    Bp = _round_up(B, tm)
    # v7x megacore: if the whole problem fits one tile, split M so both
    # TensorCores get a tile (no-op / harmless on single-TC v5e/v6e).
    if Bp // tm == 1 and Outp // tn == 1 and tm >= 16:
        tm = _round_up(tm // 2, 8)
        Bp = _round_up(B, tm)

    x_p = jnp.pad(x, ((0, Bp - B), (0, Inp - In))).astype(in_dtype)

    grid = (Bp // tm, Outp // tn, Inp // tk)
    in_bytes = jnp.dtype(in_dtype).itemsize
    out_bytes = jnp.dtype(x.dtype).itemsize
    # Truthful estimate: padded shapes and per-tile re-read factors.
    bytes_accessed = (
        in_bytes * Bp * Inp * (Outp // tn)      # x streamed once per N tile
        + in_bytes * Inp * Outp * (Bp // tm)    # W streamed once per M tile
        + 4 * Outp                              # bias
        + out_bytes * Bp * Outp                 # output writeback
    )

    out = pl.pallas_call(
        _matmul_bias_kernel,
        out_shape=jax.ShapeDtypeStruct((Bp, Outp), x.dtype),
        grid_spec=pltpu.PrefetchScalarGridSpec(
            num_scalar_prefetch=0,
            grid=grid,
            in_specs=[
                pl.BlockSpec((tm, tk), lambda i, j, k: (i, k)),
                # TODO(synk): on v5e sweep pipeline_mode=pl.Buffered(3) here
                # if DMA is still exposed after the tile enlargement.
                pl.BlockSpec((tk, tn), lambda i, j, k: (k, j)),
                pl.BlockSpec((1, tn), lambda i, j, k: (0, j)),
            ],
            out_specs=pl.BlockSpec((tm, tn), lambda i, j, k: (i, j)),
            scratch_shapes=[pltpu.VMEM((tm, tn), jnp.float32)],
        ),
        compiler_params=pltpu.CompilerParams(
            dimension_semantics=("parallel", "parallel", "arbitrary"),
            # Headroom over the ~16 MiB footprint, but under v7x's 64 MiB.
            vmem_limit_bytes=48 * 1024 * 1024,
        ),
        cost_estimate=pl.CostEstimate(
            flops=2 * Bp * Inp * Outp,
            transcendentals=0,
            bytes_accessed=bytes_accessed,
        ),
    )(x_p, params["wt"], params["b"])
    return out[:B, :Out]


def linear_forward(x, weight, bias, *, use_bf16=False):
    """PyTorch nn.Linear semantics: y = x @ W^T + b.

    x: [B, In], weight: [Out, In] (PyTorch layout), bias: [Out] -> [B, Out].
    use_bf16: cast x/W to bf16 for ~2-3x MXU rate (f32 accumulation kept);
    off by default for exact fp32 parity with the PyTorch reference.
    """
    if x.shape[1] == 1 and weight.shape[0] == 1:
        return _linear_1x1(x, weight, bias)
    params = prepare_linear_params(weight, bias, use_bf16=use_bf16)
    return _linear_tiled(x, params)


if __name__ == "__main__":
    key = jax.random.PRNGKey(0)

    # Exact module: nn.Linear(1, 1) with weight=2.0, bias=1.0, batch 8.
    x = jax.random.normal(key, (8, 1), dtype=jnp.float32)
    weight = jnp.full((1, 1), 2.0, dtype=jnp.float32)  # [out, in]
    bias = jnp.full((1,), 1.0, dtype=jnp.float32)      # [out]

    out = jax.block_until_ready(linear_forward(x, weight, bias))
    ref = x * 2.0 + 1.0
    assert out.shape == (8, 1)
    assert jnp.allclose(out, ref, atol=1e-6), (out, ref)

    # Also exercise the general tiled path at a small "real" Linear size,
    # with the weight transpose/pad hoisted into a one-time prepare step.
    k1, k2, k3 = jax.random.split(key, 3)
    B2, In2, Out2 = 64, 96, 80
    x2 = jax.random.normal(k1, (B2, In2), dtype=jnp.float32)
    w2 = jax.random.normal(k2, (Out2, In2), dtype=jnp.float32) * 0.1
    b2 = jax.random.normal(k3, (Out2,), dtype=jnp.float32)
    params2 = prepare_linear_params(w2, b2, use_bf16=False)
    out2 = jax.block_until_ready(_linear_tiled(x2, params2))
    ref2 = x2 @ w2.T + b2
    assert out2.shape == (B2, Out2)
    assert jnp.allclose(out2, ref2, atol=1e-4, rtol=1e-4)

    print("KERNEL_OK")
</pallas_src>

<mosaic_0001>
module attributes {stable_mosaic.version = 11 : i64} {
  func.func @_fma_kernel(%arg0: i32, %arg1: memref<1xf32, #tpu.memory_space<smem>>, %arg2: memref<1xf32, #tpu.memory_space<smem>>, %arg3: memref<8x512xf32, #tpu.memory_space<vmem>>, %arg4: memref<8x512xf32, #tpu.memory_space<vmem>>) attributes {dimension_semantics = [#tpu.dimension_semantics<parallel>], iteration_bounds = array<i64: 1>, scalar_prefetch = 0 : i64, scratch_operands = 0 : i64, tpu.core_type = #tpu.core_type<tc>, window_params = [{transform_indices = @transform_0, window_bounds = array<i64: 1>}, {transform_indices = @transform_1, window_bounds = array<i64: 1>}, {transform_indices = @transform_2, window_bounds = array<i64: 8, 512>}, {transform_indices = @transform_3, window_bounds = array<i64: 8, 512>}]} {
    %c0 = arith.constant 0 : index
    %0 = memref.load %arg1[%c0] : memref<1xf32, #tpu.memory_space<smem>>
    %c0_0 = arith.constant 0 : index
    %1 = memref.load %arg2[%c0_0] : memref<1xf32, #tpu.memory_space<smem>>
    %c0_1 = arith.constant 0 : index
    %c0_2 = arith.constant 0 : index
    %2 = vector.load %arg3[%c0_1, %c0_2] : memref<8x512xf32, #tpu.memory_space<vmem>>, vector<8x512xf32>
    %3 = vector.broadcast %0 : f32 to vector<8x512xf32>
    %4 = arith.mulf %2, %3 : vector<8x512xf32>
    %5 = vector.broadcast %1 : f32 to vector<8x512xf32>
    %6 = arith.addf %4, %5 : vector<8x512xf32>
    %c0_3 = arith.constant 0 : index
    %c0_4 = arith.constant 0 : index
    %7 = vector.load %arg4[%c0_3, %c0_4] : memref<8x512xf32, #tpu.memory_space<vmem>>, vector<8x512xf32>
    tpu.vector_store %arg4[%c0_3, %c0_4], %6 {strides = array<i32>} : memref<8x512xf32, #tpu.memory_space<vmem>>, vector<8x512xf32>,
    return
  }
  func.func @transform_0(%arg0: i32) -> i32 {
    %c0_i32 = arith.constant 0 : i32
    %c0_i32_0 = arith.constant 0 : i32
    return %c0_i32 : i32
  }
  func.func @transform_1(%arg0: i32) -> i32 {
    %c0_i32 = arith.constant 0 : i32
    %c0_i32_0 = arith.constant 0 : i32
    return %c0_i32 : i32
  }
  func.func @transform_2(%arg0: i32) -> (i32, i32) {
    %c0_i32 = arith.constant 0 : i32
    %c0_i32_0 = arith.constant 0 : i32
    return %arg0, %c0_i32 : i32, i32
  }
  func.func @transform_3(%arg0: i32) -> (i32, i32) {
    %c0_i32 = arith.constant 0 : i32
    %c0_i32_0 = arith.constant 0 : i32
    return %arg0, %c0_i32 : i32, i32
  }
}

</mosaic_0001>

<bundles_post_ra>
// kernel: tpu_custom_call.1
= control target key start
LH: loop header
LB: loop body
LE: loop exit
PB: predicated region body
PF: predicated region fallthrough
CT: control target
= control target key end

     0   :  { %10 = vsyncpa [#allocation5], 0  ;;  %s156_s0 = inlined_call_operand.<no memory space> [shape: f32[1], index: 0, kind: input, shape index: {}]   ;;  %s157_s1 = inlined_call_operand.<no memory space> [shape: f32[1], index: 1, kind: input, shape index: {}]   ;;  %s158_s2 = inlined_call_operand.hbm [shape: f32[8,512], index: 2, kind: input, shape index: {}]   ;;  %s159_s3 = inlined_call_operand.hbm [shape: f32[8,512], index: 3, kind: output, shape index: {}]  }
   0x1   :  { %11 = vsyncpa [#allocation6], 0  ;;  %s21_s14 = sshll.u32 %s158_s2, 4  ;;  %s122_s15 = smov [#allocation4]   ;;  %s22_s14 = int_to_ptr.hbm [resolvable:$true] %s21_s14 }
   0x2   :  { %s23_s16 = sshll.u32 %s122_s15, 4  ;;  %s24_s16 = int_to_ptr.vmem [resolvable:$true] %s23_s16 }
   0x3   :  { %26 = dma.hbm_to_vmem [thread:$0]  %s22_s14, 512, %s24_s16, [#allocation5]  }
   0x4   :  { %118 = dma.done.wait [#allocation5], 512  }
   0x5   :  { %119 = vsyncadd [#allocation5], 4294966784  ;;  %v37_v0 = vstv %s156_s0  ;;  %v33_v1 = vld [vmem:[#allocation4] sm:$0xff]  ;;  %v42_v2 = vstv %s157_s1  ;;  %v34_v3 = vld [vmem:[#allocation4 + $0x8] sm:$0xff]  ;;  %s123_s2 = smov [#allocation7]   ;;  %s58_s0 = sshll.u32 %s159_s3, 4  ;;  %s59_s0 = int_to_ptr.hbm [resolvable:$true] %s58_s0 }
   0x6   :  { %v35_v4 = vld [vmem:[#allocation4 + $0x10] sm:$0xff]  ;;  %v38_v5 = vmul.f32 %v37_v0, %v33_v1  ;;  %v39_v6 = vmul.f32 %v37_v0, %v34_v3  ;;  %v36_v8 = vld [vmem:[#allocation4 + $0x18] sm:$0xff]  ;;  %s56_s21 = sshll.u32 %s123_s2, 4  ;;  %s57_s21 = int_to_ptr.vmem [resolvable:$true] %s56_s21 }
   0x7   :  { %v40_v7 = vmul.f32 %v37_v0, %v35_v4  ;;  %v41_v9 = vmul.f32 %v37_v0, %v36_v8 }
   0x8   :  { %v43_v10 = vadd.f32 %v42_v2, %v38_v5  ;;  %v44_v11 = vadd.f32 %v42_v2, %v39_v6 }
   0x9   :  { %v45_v12 = vadd.f32 %v42_v2, %v40_v7  ;;  %v46_v13 = vadd.f32 %v42_v2, %v41_v9 }
   0xa   :  { %47 = vst [vmem:[#allocation7] sm:$0xff] %v43_v10 }
   0xb   :  { %48 = vst [vmem:[#allocation7 + $0x8] sm:$0xff] %v44_v11 }
   0xc   :  { %49 = vst [vmem:[#allocation7 + $0x10] sm:$0xff] %v45_v12 }
   0xd   :  { %50 = vst [vmem:[#allocation7 + $0x18] sm:$0xff] %v46_v13 }
   0xe   :  { %61 = dma.vmem_to_hbm [thread:$0]  %s57_s21, 512, %s59_s0, [#allocation6]  }
   0xf   :  { %120 = dma.done.wait [#allocation6], 512  }
  0x10   :  { %121 = vsyncadd [#allocation6], 4294966784 }
  0x11   :  { %66 = vsyncpa [#allocation5], 1 }
  0x12   :  { %67 = vsyncpa [#allocation6], 1 }

</bundles_post_ra>
